<compile_context>
chip_gen: v5e
topology: v5e:2x2
jax: 0.10.0
libtpu: 0.0.40
codegen_flags: <defaults>
</compile_context>

<pallas_src>
import functools

import jax
import jax.numpy as jnp
from jax.experimental import pallas as pl
from jax.experimental.pallas import tpu as pltpu


def bridging_kernel(x_ref, w_ref, b_ref, o_ref):
    # x_ref: (B_t, C, HW)  activation tile, native NCHW layout (HW on lanes)
    # w_ref: (C, OUT)      fused weight  (BN scale + 1/(H*W) folded in)
    # b_ref: (1, OUT)      fused bias    (Linear bias + BN shift folded in), f32
    # o_ref: (B_t, OUT)
    # Global sum-pool as a lane (last-axis) reduction with f32 accumulation,
    # without materializing a full f32 upcast of the tile.
    pooled = jnp.sum(x_ref[...], axis=-1, dtype=jnp.float32)          # (B_t, C)
    y = jnp.dot(pooled.astype(w_ref.dtype), w_ref[...],
                preferred_element_type=jnp.float32) + b_ref[...]
    o_ref[...] = jnp.maximum(y, 0.0).astype(o_ref.dtype)              # ReLU (dropout = id)


def _round_up(x, m):
    return (x + m - 1) // m * m


def _vmem_budget_bytes():
    # Generation-aware VMEM budget: ~80% of physical capacity
    # (128 MiB on v5e/v6e, 64 MiB per TensorCore on v7x), conservative fallback.
    try:
        cap = int(pltpu.get_tpu_info().vmem_capacity_bytes)
    except Exception:
        cap = 64 << 20
    return int(cap * 0.8)


def _pick_block_b(B, C, HW, OUT, x_itemsize, w_itemsize, budget):
    """Largest batch tile (multiple of 8) whose working set fits the VMEM
    budget, keeping >= 2 grid steps when B allows (v7x dual-TC sharding)."""
    if B <= 8:
        return int(B)                       # single block == full batch dim
    sub = 16 if x_itemsize < 4 else 8
    c_pad = _round_up(C, sub)
    hw_pad = _round_up(HW, 128)             # lane padding of the pooled axis
    out_pad = _round_up(OUT, 128)
    # Resident fused params (constant index_map) — double-buffered by default.
    resident = 2 * (_round_up(C, 8) * out_pad * w_itemsize + 8 * out_pad * 4)
    # Per-batch-row cost: double-buffered x tile + double-buffered output tile
    # + the f32 pooled accumulator temporary.
    per_row = (2 * c_pad * hw_pad * x_itemsize
               + 2 * out_pad * 4
               + _round_up(C, 128) * 4)
    headroom = 2 << 20
    avail = max(budget - resident - headroom, 8 * per_row)
    block_b = max(8, (avail // per_row) // 8 * 8)
    if B >= 16:
        # Keep >= 2 grid steps so "parallel" can shard across both TensorCores
        # on v7x (near-free on single-TC v5e/v6e).
        block_b = min(block_b, _round_up((B + 1) // 2, 8))
    block_b = min(block_b, (B // 8) * 8)    # never larger than the batch
    return int(max(block_b, 8))


@functools.partial(jax.jit, static_argnames=("eps", "block_b"))
def bridging_layers_forward(x_nchw, w_t, b, gamma, beta,
                            running_mean, running_var,
                            *, eps=1e-5, block_b=None):
    """x_nchw: (B, C, H, W). w_t: (C, OUT) (Linear weight transposed).
    b / gamma / beta / running_mean / running_var: (1, OUT). Returns (B, OUT) f32."""
    B, C, H, W = x_nchw.shape
    OUT = w_t.shape[1]
    HW = H * W

    # ---- Fold eval-mode BN + Linear bias + 1/(H*W) into (w', b') -----------
    #   relu(((mean_pool @ w + b) - mu) * g * rsqrt(var+eps) + beta)
    # = relu(sum_pool @ (w * s / HW) + ((b - mu) * s + beta)),  s = g*rsqrt(var+eps)
    scale = gamma.astype(jnp.float32) * jax.lax.rsqrt(
        running_var.astype(jnp.float32) + jnp.float32(eps))
    w_dtype = jnp.bfloat16 if x_nchw.dtype == jnp.bfloat16 else jnp.float32
    w_fused = (w_t.astype(jnp.float32) * scale
               / jnp.float32(HW)).astype(w_dtype)                        # (C, OUT)
    b_fused = ((b.astype(jnp.float32) - running_mean.astype(jnp.float32)) * scale
               + beta.astype(jnp.float32))                               # (1, OUT) f32

    # ---- Free metadata reshape: native NCHW -> (B, C, H*W), no extra HBM pass
    x = x_nchw.reshape(B, C, HW)
    x_itemsize = jnp.dtype(x.dtype).itemsize
    w_itemsize = jnp.dtype(w_dtype).itemsize

    # ---- Tile the batch; no padding (ragged last block is masked on write) -
    budget = _vmem_budget_bytes()
    if block_b is None:
        block_b = _pick_block_b(B, C, HW, OUT, x_itemsize, w_itemsize, budget)
    block_b = int(block_b)
    grid = (pl.cdiv(B, block_b),)

    # ---- Generation-aware VMEM limit (includes lane/sublane padding) -------
    sub = 16 if x_itemsize < 4 else 8
    vmem_needed = (2 * block_b * _round_up(C, sub) * _round_up(HW, 128) * x_itemsize
                   + 2 * (_round_up(C, 8) * _round_up(OUT, 128) * w_itemsize
                          + 8 * _round_up(OUT, 128) * 4)
                   + 2 * block_b * _round_up(OUT, 128) * 4
                   + block_b * _round_up(C, 128) * 4
                   + (2 << 20))
    vmem_limit = int(min(max(vmem_needed, 16 << 20), budget))

    cost = pl.CostEstimate(
        flops=B * HW * C + 2 * B * C * OUT,
        transcendentals=0,
        bytes_accessed=(B * HW * C * x_itemsize + C * OUT * w_itemsize
                        + OUT * 4 + B * OUT * 4),
    )

    out = pl.pallas_call(
        bridging_kernel,
        out_shape=jax.ShapeDtypeStruct((B, OUT), jnp.float32),
        grid_spec=pltpu.PrefetchScalarGridSpec(
            num_scalar_prefetch=0,
            grid=grid,
            in_specs=[
                pl.BlockSpec((block_b, C, HW), lambda i: (i, 0, 0)),  # x streams
                pl.BlockSpec((C, OUT), lambda i: (0, 0)),             # w' resident
                pl.BlockSpec((1, OUT), lambda i: (0, 0)),             # b' resident
            ],
            out_specs=pl.BlockSpec((block_b, OUT), lambda i: (i, 0)),
        ),
        compiler_params=pltpu.CompilerParams(
            dimension_semantics=("parallel",),
            vmem_limit_bytes=vmem_limit,
        ),
        cost_estimate=cost,
    )(x, w_fused, b_fused)

    return out


def _reference(x_nchw, w_t, b, gamma, beta, running_mean, running_var, eps=1e-5):
    pooled = jnp.mean(x_nchw.astype(jnp.float32), axis=(2, 3))
    y = pooled @ w_t.astype(jnp.float32) + b
    y = (y - running_mean) * jax.lax.rsqrt(running_var + eps) * gamma + beta
    return jnp.maximum(y, 0.0)


if __name__ == "__main__":
    # Small shapes consistent with the module (input_channels -> output_size).
    B, C, H, W = 4, 32, 8, 8       # features['layer4']: (B, C, H, W)
    OUT = 128                      # output_size (lane-dense multiple of 128)

    key = jax.random.PRNGKey(0)
    kx, kw, kb, kg, kbeta, km, kv = jax.random.split(key, 7)

    x = jax.random.normal(kx, (B, C, H, W), dtype=jnp.float32)

    # Linear weight stored transposed: (C, OUT); PyTorch-style uniform init.
    bound = 1.0 / jnp.sqrt(jnp.float32(C))
    w_t = jax.random.uniform(kw, (C, OUT), jnp.float32, -bound, bound)
    b = jax.random.uniform(kb, (1, OUT), jnp.float32, -bound, bound)

    # Non-trivial BatchNorm1d params / running stats (eval mode).
    gamma = 1.0 + 0.1 * jax.random.normal(kg, (1, OUT), jnp.float32)
    beta = 0.05 * jax.random.normal(kbeta, (1, OUT), jnp.float32)
    running_mean = 0.1 * jax.random.normal(km, (1, OUT), jnp.float32)
    running_var = jnp.ones((1, OUT), jnp.float32) * 0.9

    out = bridging_layers_forward(x, w_t, b, gamma, beta,
                                  running_mean, running_var)
    out = jax.block_until_ready(out)

    ref = _reference(x, w_t, b, gamma, beta, running_mean, running_var)
    assert out.shape == (B, OUT)
    assert jnp.allclose(out, ref, atol=1e-4, rtol=1e-4), (
        float(jnp.max(jnp.abs(out - ref))))

    print("KERNEL_OK")
</pallas_src>

<mosaic_0001>
module attributes {stable_mosaic.version = 11 : i64} {
  func.func @bridging_kernel(%arg0: i32, %arg1: memref<4x32x64xf32, #tpu.memory_space<vmem>>, %arg2: memref<32x128xf32, #tpu.memory_space<vmem>>, %arg3: memref<1x128xf32, #tpu.memory_space<vmem>>, %arg4: memref<4x128xf32, #tpu.memory_space<vmem>>) attributes {dimension_semantics = [#tpu.dimension_semantics<parallel>], iteration_bounds = array<i64: 1>, scalar_prefetch = 0 : i64, scratch_operands = 0 : i64, tpu.core_type = #tpu.core_type<tc>, window_params = [{transform_indices = @transform_0, window_bounds = array<i64: 4, 32, 64>}, {pipeline_mode = #tpu.pipeline_mode<synchronous>, transform_indices = @transform_1, window_bounds = array<i64: 32, 128>}, {pipeline_mode = #tpu.pipeline_mode<synchronous>, transform_indices = @transform_2, window_bounds = array<i64: 1, 128>}, {transform_indices = @transform_3, window_bounds = array<i64: 4, 128>}]} {
    %c0 = arith.constant 0 : index
    %c0_0 = arith.constant 0 : index
    %c0_1 = arith.constant 0 : index
    %0 = vector.load %arg1[%c0, %c0_0, %c0_1] : memref<4x32x64xf32, #tpu.memory_space<vmem>>, vector<4x32x64xf32>
    %cst = arith.constant dense<0.000000e+00> : vector<4x32xf32>
    %1 = vector.multi_reduction <add>, %0, %cst [2] : vector<4x32x64xf32> to vector<4x32xf32>
    %c0_2 = arith.constant 0 : index
    %c0_3 = arith.constant 0 : index
    %2 = vector.load %arg2[%c0_2, %c0_3] : memref<32x128xf32, #tpu.memory_space<vmem>>, vector<32x128xf32>
    %cst_4 = arith.constant dense<0.000000e+00> : vector<4x128xf32>
    %3 = tpu.matmul %1, %2, %cst_4 {dimension_numbers = #tpu.dot_dimension_numbers<[1], [0], [0], [1], [0, 0, 1, 1], [], []>} : vector<4x32xf32>, vector<32x128xf32>, vector<4x128xf32> -> vector<4x128xf32>
    %c0_5 = arith.constant 0 : index
    %c0_6 = arith.constant 0 : index
    %4 = vector.load %arg3[%c0_5, %c0_6] : memref<1x128xf32, #tpu.memory_space<vmem>>, vector<1x128xf32>
    %5 = vector.broadcast %4 : vector<1x128xf32> to vector<4x128xf32>
    %6 = arith.addf %3, %5 : vector<4x128xf32>
    %cst_7 = arith.constant 0.000000e+00 : f32
    %7 = vector.broadcast %cst_7 : f32 to vector<4x128xf32>
    %8 = arith.maximumf %6, %7 : vector<4x128xf32>
    %c0_8 = arith.constant 0 : index
    %c0_9 = arith.constant 0 : index
    %9 = vector.load %arg4[%c0_8, %c0_9] : memref<4x128xf32, #tpu.memory_space<vmem>>, vector<4x128xf32>
    tpu.vector_store %arg4[%c0_8, %c0_9], %8 {strides = array<i32>} : memref<4x128xf32, #tpu.memory_space<vmem>>, vector<4x128xf32>,
    return
  }
  func.func @transform_0(%arg0: i32) -> (i32, i32, i32) {
    %c0_i32 = arith.constant 0 : i32
    %c0_i32_0 = arith.constant 0 : i32
    %c0_i32_1 = arith.constant 0 : i32
    return %arg0, %c0_i32, %c0_i32_0 : i32, i32, i32
  }
  func.func @transform_1(%arg0: i32) -> (i32, i32) {
    %c0_i32 = arith.constant 0 : i32
    %c0_i32_0 = arith.constant 0 : i32
    %c0_i32_1 = arith.constant 0 : i32
    return %c0_i32, %c0_i32_0 : i32, i32
  }
  func.func @transform_2(%arg0: i32) -> (i32, i32) {
    %c0_i32 = arith.constant 0 : i32
    %c0_i32_0 = arith.constant 0 : i32
    %c0_i32_1 = arith.constant 0 : i32
    return %c0_i32, %c0_i32_0 : i32, i32
  }
  func.func @transform_3(%arg0: i32) -> (i32, i32) {
    %c0_i32 = arith.constant 0 : i32
    %c0_i32_0 = arith.constant 0 : i32
    return %arg0, %c0_i32 : i32, i32
  }
}

</mosaic_0001>

<bundles_post_ra>
// kernel: bridging_layers_forward.1
= control target key start
LH: loop header
LB: loop body
LE: loop exit
PB: predicated region body
PF: predicated region fallthrough
CT: control target
= control target key end

     0   :  { %vm31_vm0 = vcmask 523264   ;;  %s331_s0 = inlined_call_operand.vmem [shape: f32[4,32,64], index: 0, kind: input, shape index: {}]   ;;  %s332_s1 = inlined_call_operand.vmem [shape: f32[32,128], index: 1, kind: input, shape index: {}]   ;;  %s333_s2 = inlined_call_operand.vmem [shape: f32[1,128], index: 2, kind: input, shape index: {}]   ;;  %s334_s3 = inlined_call_operand.hbm [shape: f32[4,128], index: 3, kind: output, shape index: {}]  }
   0x1   :  { %v19_v0 = vld [vmem:[%s331_s0 + $0x20] sm:$0xff]  ;;  %v17_v1 = vld [vmem:[%s331_s0 + $0x10] sm:$0xff]  ;;  %v20_v6 = vld [vmem:[%s331_s0 + $0x28] sm:$0xff] }
   0x2   :  { %v15_v2 = vld [vmem:[%s331_s0] sm:$0xff]  ;;  %v44_v3 = vsel %vm31_vm0, %v19_v0, 0.0  ;;  %v38_v4 = vsel %vm31_vm0, %v17_v1, 0.0  ;;  %v21_v7 = vld [vmem:[%s331_s0 + $0x30] sm:$0xff]  ;;  %v16_v8 = vld [vmem:[%s331_s0 + $0x8] sm:$0xff] }
   0x3   :  { %v32_v5 = vsel %vm31_vm0, %v15_v2, 0.0  ;;  %45 = vadd.xlane.f32.xlu1 %v44_v3  ;;  %39 = vadd.xlane.f32.xlu2 %v38_v4 }
   0x4   :  { %33 = vadd.xlane.f32.xlu0 %v32_v5 }
   0x5   :  { %8 = vsyncpa [#allocation3], 0  ;;  %v47_v9 = vsel %vm31_vm0, %v20_v6, 0.0  ;;  %v50_v10 = vsel %vm31_vm0, %v21_v7, 0.0  ;;  %v35_v11 = vsel %vm31_vm0, %v16_v8, 0.0  ;;  %v24_v12 = vld [vmem:[%s331_s0 + $0x48] sm:$0xff]  ;;  %v104_v45 = vlaneseq }
   0x6   :  { %v18_v13 = vld [vmem:[%s331_s0 + $0x18] sm:$0xff]  ;;  %v23_v14 = vld [vmem:[%s331_s0 + $0x40] sm:$0xff]  ;;  %v59_v15 = vsel %vm31_vm0, %v24_v12, 0.0  ;;  %v25_v18 = vld [vmem:[%s331_s0 + $0x50] sm:$0xff]  ;;  %vm109_vm1 = vcmask 130112   ;;  %vm113_vm2 = vcmask 195712  }
   0x7   :  { %v41_v16 = vsel %vm31_vm0, %v18_v13, 0.0  ;;  %v56_v17 = vsel %vm31_vm0, %v23_v14, 0.0  ;;  %v27_v19 = vld [vmem:[%s331_s0 + $0x60] sm:$0xff]  ;;  %v22_v20 = vld [vmem:[%s331_s0 + $0x38] sm:$0xff]  ;;  %v62_v21 = vsel %vm31_vm0, %v25_v18, 0.0  ;;  %v29_v25 = vld [vmem:[%s331_s0 + $0x70] sm:$0xff] }
   0x8   :  { %v68_v22 = vsel %vm31_vm0, %v27_v19, 0.0  ;;  %v53_v23 = vsel %vm31_vm0, %v22_v20, 0.0  ;;  %v26_v24 = vld [vmem:[%s331_s0 + $0x58] sm:$0xff]  ;;  %v28_v26 = vld [vmem:[%s331_s0 + $0x68] sm:$0xff]  ;;  %v74_v28 = vsel %vm31_vm0, %v29_v25, 0.0  ;;  %v82_v36 = vld [vmem:[%s332_s1 + $0x10] sm:$0xff] }
   0x9   :  { %v65_v27 = vsel %vm31_vm0, %v26_v24, 0.0  ;;  %v71_v29 = vsel %vm31_vm0, %v28_v26, 0.0  ;;  %v30_v30 = vld [vmem:[%s331_s0 + $0x78] sm:$0xff]  ;;  %v81_v40 = vld [vmem:[%s332_s1 + $0x8] sm:$0xff]  ;;  %v80_v41 = vld [vmem:[%s332_s1] sm:$0xff]  ;;  %v105_v47 = vand.u32 127, %v104_v45 }
   0xa   :  { %v77_v31 = vsel %vm31_vm0, %v30_v30, 0.0  ;;  %v83_v35 = vld [vmem:[%s332_s1 + $0x18] sm:$0xff]  ;;  %vm117_vm3 = vcmask 261312   ;;  %vm140_vm4 = vcmask 1041409   ;;  %vm142_vm5 = vcmask 1042434   ;;  %s216_s25 = smov [#allocation2]  }
   0xb   :  { %48 = vadd.xlane.f32.xlu1 %v47_v9  ;;  %51 = vadd.xlane.f32.xlu2 %v50_v10  ;;  %v107_v50 = vadd.s32 4294967288, %v105_v47  ;;  %v111_v53 = vadd.s32 4294967280, %v105_v47  ;;  %v115_v57 = vadd.s32 4294967272, %v105_v47  ;;  %vm144_vm6 = vcmask 1043459   ;;  %v189_v24 = vld [vmem:[%s333_s2] ss:$0 sm:$0xff] }
   0xc   :  { %36 = vadd.xlane.f32.xlu0 %v35_v11  ;;  %161 = vmatpush.msra.mxu0 %v83_v35  ;;  %vm146_vm7 = vcmask 261120   ;;  %s176_s26 = sshll.u32 %s216_s25, 4  ;;  %s178_s29 = sshll.u32 %s334_s3, 4  ;;  %s177_s26 = int_to_ptr.vmem [resolvable:$true] %s176_s26  ;;  %s179_s29 = int_to_ptr.hbm [resolvable:$true] %s178_s29 }
   0xe   :  { %162 = vmatpush.msra.mxu0 %v82_v36 }
  0x10   :  { %163 = vmatpush.msra.mxu0 %v81_v40 }
  0x12   :  { %164 = vmatpush.msra.mxu0 %v80_v41 }
  0x13   :  { %60 = vadd.xlane.f32.xlu1 %v59_v15  ;;  %42 = vadd.xlane.f32.xlu2 %v41_v16 }
  0x14   :  { %57 = vadd.xlane.f32.xlu0 %v56_v17 }
  0x1b   :  { %63 = vadd.xlane.f32.xlu1 %v62_v21  ;;  %69 = vadd.xlane.f32.xlu2 %v68_v22 }
  0x1c   :  { %54 = vadd.xlane.f32.xlu0 %v53_v23 }
  0x23   :  { %66 = vadd.xlane.f32.xlu1 %v65_v27  ;;  %75 = vadd.xlane.f32.xlu2 %v74_v28 }
  0x24   :  { %72 = vadd.xlane.f32.xlu0 %v71_v29 }
  0x2c   :  { %78 = vadd.xlane.f32.xlu0 %v77_v31 }
  0x76   :  { %v46_v32 = vpop.xlane.xlu1 %45  ;;  %v40_v33 = vpop.xlane.xlu2 %39 }
  0x77   :  { %v34_v34 = vpop.xlane.xlu0 %33  ;;  %v119_v51 = vperm.slane %v46_v32, %v105_v47  ;;  %v112_v7 = vperm.slane %v40_v33, %v111_v53 }
  0x78   :  { %v106_v55 = vperm.slane %v34_v34, %v105_v47 }
  0x7e   :  { %v49_v37 = vpop.xlane.xlu1 %48  ;;  %v52_v38 = vpop.xlane.xlu2 %51 }
  0x7f   :  { %v37_v39 = vpop.xlane.xlu0 %36  ;;  %v120_v52 = vperm.slane %v49_v37, %v107_v50  ;;  %v122_v60 = vperm.slane %v52_v38, %v111_v53 }
  0x80   :  { %v108_v56 = vperm.slane %v37_v39, %v107_v50 }
  0x81   :  { %v121_v59 = vsel %vm109_vm1, %v120_v52, %v119_v51 }
  0x82   :  { %v110_v5 = vsel %vm109_vm1, %v108_v56, %v106_v55  ;;  %v123_v8 = vsel %vm113_vm2, %v122_v60, %v121_v59 }
  0x83   :  { %v114_v14 = vsel %vm113_vm2, %v112_v7, %v110_v5 }
  0x86   :  { %v61_v42 = vpop.xlane.xlu1 %60  ;;  %v43_v43 = vpop.xlane.xlu2 %42 }
  0x87   :  { %v58_v44 = vpop.xlane.xlu0 %57  ;;  %v127_v61 = vperm.slane %v61_v42, %v107_v50  ;;  %v116_v6 = vperm.slane %v43_v43, %v115_v57 }
  0x88   :  { %v126_v62 = vperm.slane %v58_v44, %v105_v47 }
  0x89   :  { %v118_v17 = vsel %vm117_vm3, %v116_v6, %v114_v14 }
  0x8a   :  { %v128_v9 = vsel %vm109_vm1, %v127_v61, %v126_v62 }
  0x8e   :  { %v64_v46 = vpop.xlane.xlu1 %63  ;;  %v70_v49 = vpop.xlane.xlu2 %69 }
  0x8f   :  { %v55_v48 = vpop.xlane.xlu0 %54  ;;  %v129_v63 = vperm.slane %v64_v46, %v111_v53  ;;  %v133_v1 = vperm.slane %v70_v49, %v105_v47 }
  0x90   :  { %v124_v0 = vperm.slane %v55_v48, %v115_v57 }
  0x91   :  { %v130_v11 = vsel %vm113_vm2, %v129_v63, %v128_v9 }
  0x92   :  { %v125_v12 = vsel %vm117_vm3, %v124_v0, %v123_v8 }
  0x93   :  { %v141_v20 = vsel %vm140_vm4, %v125_v12, %v118_v17 }
  0x96   :  { %v67_v58 = vpop.xlane.xlu1 %66  ;;  %v76_v3 = vpop.xlane.xlu2 %75 }
  0x97   :  { %v73_v54 = vpop.xlane.xlu0 %72  ;;  %v131_v4 = vperm.slane %v67_v58, %v115_v57  ;;  %v136_v10 = vperm.slane %v76_v3, %v111_v53 }
  0x98   :  { %v134_v2 = vperm.slane %v73_v54, %v107_v50 }
  0x99   :  { %v132_v15 = vsel %vm117_vm3, %v131_v4, %v130_v11 }
  0x9a   :  { %v135_v13 = vsel %vm109_vm1, %v134_v2, %v133_v1  ;;  %v143_v22 = vsel %vm142_vm5, %v132_v15, %v141_v20 }
  0x9b   :  { %v137_v19 = vsel %vm113_vm2, %v136_v10, %v135_v13 }
  0x9f   :  { %v79_v16 = vpop.xlane.xlu0 %78 }
  0xa0   :  { %v138_v18 = vperm.slane %v79_v16, %v115_v57 }
  0xa2   :  { %v139_v21 = vsel %vm117_vm3, %v138_v18, %v137_v19 }
  0xa3   :  { %v145_v23 = vsel %vm144_vm6, %v139_v21, %v143_v22 }
  0xa4   :  { %187 = vmatmul.msk.f32.vlgmr.msra.gmra.mxu0 %vm146_vm7, %v145_v23 }
 0x121   :  { %v166_v25 = vpop.f32.mrf.mxu0 }
 0x122   :  { %v167_v26 = vadd.f32 %v189_v24, %v166_v25 }
 0x124   :  { %v169_v27 = vmax.f32 %v167_v26, 0.0 }
 0x126   :  { %170 = vst [vmem:[#allocation2] sm:$0xf] %v169_v27 }
 0x127   :  { %181 = dma.vmem_to_hbm [thread:$0]  %s177_s26, 64, %s179_s29, [#allocation3]  }
 0x128   :  { %214 = dma.done.wait [#allocation3], 64  }
 0x129   :  { %215 = vsyncadd [#allocation3], 4294967232 }
 0x12a   :  { %186 = vsyncpa [#allocation3], 1 }

</bundles_post_ra>
